<compile_context>
chip_gen: v7x
topology: tpu7x:2x2x1
jax: 0.10.0
libtpu: 0.0.40
codegen_flags: <defaults>
</compile_context>

<pallas_src>
import functools

import jax
import jax.numpy as jnp
from jax.experimental import pallas as pl
from jax.experimental.pallas import tpu as pltpu


# ---------------------------------------------------------------------------
# Fused network kernel. One grid step = (batch b, layer l) on a (C*T, D) slab.
# ---------------------------------------------------------------------------
def _fsmn_net_kernel(x_ref, fmw_ref, fmb_ref, ws_ref, wl_ref, wr_ref, we_ref,
                     be_ref, dw_ref, db_ref, o_ref, act_ref, hp_ref,
                     *, C, T, lorder, rorder, sele_layer, lpad):
    l = pl.program_id(1)
    CT = C * T
    P = ws_ref.shape[2]

    # ---- once per batch tile: featmap affine + ReLU; zero the pad rows ------
    @pl.when(l == 0)
    def _():
        h0 = jnp.dot(x_ref[0], fmw_ref[...],
                     preferred_element_type=jnp.float32)        # (CT, Dlin)
        act_ref[...] = jnp.maximum(h0 + fmb_ref[...], 0.0)
        if lorder > 1:
            hp_ref[lpad - (lorder - 1):lpad, :] = jnp.zeros(
                (lorder - 1, P), jnp.float32)
        if rorder > 0:
            hp_ref[lpad + CT:lpad + CT + rorder, :] = jnp.zeros(
                (rorder, P), jnp.float32)

    prev = act_ref[...]                                          # (CT, Dlin)

    # ---- shrink (LinearTransform, no bias) -----------------------------------
    h = jnp.dot(prev, ws_ref[0], preferred_element_type=jnp.float32)  # (CT, P)

    # stage h at an 8-aligned offset inside the zero-padded buffer
    hp_ref[lpad:lpad + CT, :] = h

    # per-row time index within its channel block (for channel-boundary masks)
    if C > 1:
        t_in = jax.lax.broadcasted_iota(jnp.int32, (CT, 1), 0) % T

    # ---- FSMN memory block (depthwise conv over time) ------------------------
    wl = wl_ref[0]                                               # (lorder, P)
    m = h
    for k in range(lorder):                  # causal taps (incl. current frame)
        d = lorder - 1 - k                   # delay of this tap
        if d >= T:
            continue                         # contributes only zeros
        tap = hp_ref[lpad - d:lpad - d + CT, :]
        if C > 1 and d > 0:
            tap = jnp.where(t_in >= d, tap, 0.0)
        m = m + wl[k:k + 1, :] * tap
    if rorder > 0:
        wr = wr_ref[0]                                           # (rorder, P)
        for j in range(rorder):              # anticausal (lookahead) taps
            a = j + 1
            if a >= T:
                continue
            tap = hp_ref[lpad + a:lpad + a + CT, :]
            if C > 1:
                tap = jnp.where(t_in < T - a, tap, 0.0)
            m = m + wr[j:j + 1, :] * tap

    # ---- expand (AffineTransform) + ReLU -------------------------------------
    y = jnp.dot(m, we_ref[0], preferred_element_type=jnp.float32) + be_ref[0]
    y = jnp.maximum(y, 0.0)                                      # (CT, Dlin)

    # layer output stays VMEM-resident for the next layer
    act_ref[...] = y

    # ---- channel-selection max pool (MaxPool2d((C, 1))) at sele_layer --------
    if C > 1:
        @pl.when(l == sele_layer)
        def _():
            ymax = act_ref[0:T, :]
            for c in range(1, C):
                ymax = jnp.maximum(ymax, act_ref[c * T:(c + 1) * T, :])
            # broadcast the selected channel so later layers stay uniform;
            # the final output reads channel 0 only.
            for c in range(C):
                act_ref[c * T:(c + 1) * T, :] = ymax

    # ---- decision affine fused into the last layer's epilogue ----------------
    @pl.when(l == pl.num_programs(1) - 1)
    def _():
        z = jnp.dot(act_ref[0:T, :], dw_ref[...],
                    preferred_element_type=jnp.float32) + db_ref[...]
        o_ref[0] = z


# ---------------------------------------------------------------------------
# Wrapper: layout plumbing + weight stacking + single pallas_call
# ---------------------------------------------------------------------------
def fsmn_sele_net_v2(params, inp, *, lorder, rorder, sele_layer):
    """inp: (B, T, C, input_dim) -> (B, T, num_syn)."""
    B, T, C, Din = inp.shape
    Dlin = params["featmap_w"].shape[1]
    P = params["mem"][0]["ws"].shape[1]
    L = len(params["mem"])
    num_syn = params["decision_w"].shape[1]
    Npad = ((num_syn + 127) // 128) * 128          # lane-dense decision output
    lpad = ((lorder - 1 + 7) // 8) * 8             # 8-aligned left zero pad
    Rpad = max(rorder, 1)

    # channel-major, time-contiguous rows: (B, C*T, Din)
    x = jnp.transpose(inp, (0, 2, 1, 3)).reshape(B, C * T, Din)

    # stack per-layer weights so a single kernel can index them by layer
    ws = jnp.stack([m["ws"] for m in params["mem"]])             # (L, Dlin, P)
    wl = jnp.stack([m["wl"] for m in params["mem"]])             # (L, lorder, P)
    if rorder > 0:
        wr = jnp.stack([m["wr"] for m in params["mem"]])         # (L, rorder, P)
    else:                                  # purely causal FSMN: dummy (unused)
        wr = jnp.zeros((L, 1, P), jnp.float32)
    we = jnp.stack([m["we"] for m in params["mem"]])             # (L, P, Dlin)
    be = jnp.stack([m["be"] for m in params["mem"]]).reshape(L, 1, Dlin)

    fmb = params["featmap_b"].reshape(1, Dlin)
    dw = jnp.zeros((Dlin, Npad), jnp.float32).at[:, :num_syn].set(
        params["decision_w"])
    db = jnp.zeros((1, Npad), jnp.float32).at[:, :num_syn].set(
        params["decision_b"])

    kernel = functools.partial(_fsmn_net_kernel, C=C, T=T, lorder=lorder,
                               rorder=rorder, sele_layer=sele_layer, lpad=lpad)

    z = pl.pallas_call(
        kernel,
        out_shape=jax.ShapeDtypeStruct((B, T, Npad), jnp.float32),
        grid_spec=pltpu.PrefetchScalarGridSpec(
            num_scalar_prefetch=0,
            grid=(B, L),
            in_specs=[
                pl.BlockSpec((1, C * T, Din), lambda b, l: (b, 0, 0)),   # input
                pl.BlockSpec((Din, Dlin), lambda b, l: (0, 0)),          # featmap W
                pl.BlockSpec((1, Dlin), lambda b, l: (0, 0)),            # featmap b
                pl.BlockSpec((1, Dlin, P), lambda b, l: (l, 0, 0)),      # shrink W
                pl.BlockSpec((1, lorder, P), lambda b, l: (l, 0, 0)),    # left taps
                pl.BlockSpec((1, Rpad, P), lambda b, l: (l, 0, 0)),      # right taps
                pl.BlockSpec((1, P, Dlin), lambda b, l: (l, 0, 0)),      # expand W
                pl.BlockSpec((1, 1, Dlin), lambda b, l: (l, 0, 0)),      # expand b
                pl.BlockSpec((Dlin, Npad), lambda b, l: (0, 0)),         # decision W
                pl.BlockSpec((1, Npad), lambda b, l: (0, 0)),            # decision b
            ],
            out_specs=pl.BlockSpec((1, T, Npad), lambda b, l: (b, 0, 0)),
            scratch_shapes=[
                pltpu.VMEM((C * T, Dlin), jnp.float32),                  # activation
                pltpu.VMEM((lpad + C * T + rorder, P), jnp.float32),     # fsmn staging
            ],
        ),
        compiler_params=pltpu.CompilerParams(
            dimension_semantics=("parallel", "arbitrary")),
    )(x, params["featmap_w"], fmb, ws, wl, wr, we, be, dw, db)

    return z[:, :, :num_syn]


# ---------------------------------------------------------------------------
# Deterministic parameter init (shapes follow the PyTorch module __init__)
# ---------------------------------------------------------------------------
def init_params(key, *, input_dim, linear_dim, proj_dim, lorder, rorder,
                num_syn, fsmn_layers):
    def rnd(k, shape, scale=0.1):
        return scale * jax.random.normal(k, shape, dtype=jnp.float32)

    keys = jax.random.split(key, 3 + fsmn_layers)
    params = {
        "featmap_w": rnd(keys[0], (input_dim, linear_dim)),   # Linear.weight^T
        "featmap_b": rnd(keys[1], (linear_dim,)),
        "mem": [],
    }
    for i in range(fsmn_layers):
        ks = jax.random.split(keys[3 + i], 5)
        params["mem"].append({
            "ws": rnd(ks[0], (linear_dim, proj_dim)),   # shrink (no bias)
            "wl": rnd(ks[1], (lorder, proj_dim)),       # conv_left.weight[d,0,k,0]
            "wr": rnd(ks[2], (max(rorder, 1), proj_dim)),  # conv_right taps
            "we": rnd(ks[3], (proj_dim, linear_dim)),   # expand
            "be": rnd(ks[4], (linear_dim,)),
        })
    kd = jax.random.split(keys[2], 2)
    params["decision_w"] = rnd(kd[0], (linear_dim, num_syn))
    params["decision_b"] = rnd(kd[1], (num_syn,))
    return params


# ---------------------------------------------------------------------------
# Pure-JAX reference (mirrors the PyTorch forward semantics)
# ---------------------------------------------------------------------------
def ref_forward(params, inp, *, lorder, rorder, sele_layer):
    B, T, C, Din = inp.shape
    x = jax.nn.relu(
        jnp.einsum("btcd,de->btce", inp, params["featmap_w"])
        + params["featmap_b"])
    y = x
    for i, layer in enumerate(params["mem"]):
        h = jnp.einsum("btcd,dp->btcp", x, layer["ws"])
        hp = jnp.pad(h, ((0, 0), (lorder - 1, rorder), (0, 0), (0, 0)))
        m = h
        for k in range(lorder):
            m = m + layer["wl"][k] * hp[:, k:k + T]
        for j in range(rorder):
            m = m + layer["wr"][j] * hp[:, lorder + j:lorder + j + T]
        y = jax.nn.relu(
            jnp.einsum("btcp,pd->btcd", m, layer["we"]) + layer["be"])
        if i == sele_layer:
            y = jnp.max(y, axis=2, keepdims=True)
        x = y
    y = y[:, :, 0, :]
    return jnp.einsum("btd,dn->btn", y, params["decision_w"]) + params["decision_b"]


if __name__ == "__main__":
    # small, forward-consistent shapes (MaxPool2d channel param == C)
    B, T, C = 2, 8, 2
    input_dim, linear_dim, proj_dim = 16, 32, 16
    lorder, rorder = 4, 1
    num_syn, fsmn_layers, sele_layer = 5, 3, 1

    key = jax.random.PRNGKey(0)
    kp, kx = jax.random.split(key)
    params = init_params(kp, input_dim=input_dim, linear_dim=linear_dim,
                         proj_dim=proj_dim, lorder=lorder, rorder=rorder,
                         num_syn=num_syn, fsmn_layers=fsmn_layers)
    inp = jax.random.normal(kx, (B, T, C, input_dim), dtype=jnp.float32)

    fwd = jax.jit(functools.partial(fsmn_sele_net_v2, lorder=lorder,
                                    rorder=rorder, sele_layer=sele_layer))
    z = jax.block_until_ready(fwd(params, inp))

    z_ref = ref_forward(params, inp, lorder=lorder, rorder=rorder,
                        sele_layer=sele_layer)
    assert z.shape == (B, T, num_syn), z.shape
    max_err = float(jnp.max(jnp.abs(z - z_ref)))
    assert jnp.allclose(z, z_ref, rtol=2e-2, atol=3e-3), max_err

    print("KERNEL_OK")
</pallas_src>

<mosaic_0001>
module attributes {stable_mosaic.version = 11 : i64} {
  func.func @_fsmn_net_kernel(%arg0: i32, %arg1: i32, %arg2: memref<1x16x16xf32, #tpu.memory_space<vmem>>, %arg3: memref<16x32xf32, #tpu.memory_space<vmem>>, %arg4: memref<1x32xf32, #tpu.memory_space<vmem>>, %arg5: memref<1x32x16xf32, #tpu.memory_space<vmem>>, %arg6: memref<1x4x16xf32, #tpu.memory_space<vmem>>, %arg7: memref<1x1x16xf32, #tpu.memory_space<vmem>>, %arg8: memref<1x16x32xf32, #tpu.memory_space<vmem>>, %arg9: memref<1x1x32xf32, #tpu.memory_space<vmem>>, %arg10: memref<32x128xf32, #tpu.memory_space<vmem>>, %arg11: memref<1x128xf32, #tpu.memory_space<vmem>>, %arg12: memref<1x8x128xf32, #tpu.memory_space<vmem>>, %arg13: memref<16x32xf32, #tpu.memory_space<vmem>>, %arg14: memref<25x16xf32, #tpu.memory_space<vmem>>) attributes {dimension_semantics = [#tpu.dimension_semantics<parallel>, #tpu.dimension_semantics<arbitrary>], iteration_bounds = array<i64: 2, 3>, scalar_prefetch = 0 : i64, scratch_operands = 2 : i64, tpu.core_type = #tpu.core_type<tc>, window_params = [{transform_indices = @transform_0, window_bounds = array<i64: 1, 16, 16>}, {pipeline_mode = #tpu.pipeline_mode<synchronous>, transform_indices = @transform_1, window_bounds = array<i64: 16, 32>}, {pipeline_mode = #tpu.pipeline_mode<synchronous>, transform_indices = @transform_2, window_bounds = array<i64: 1, 32>}, {transform_indices = @transform_3, window_bounds = array<i64: 1, 32, 16>}, {transform_indices = @transform_4, window_bounds = array<i64: 1, 4, 16>}, {transform_indices = @transform_5, window_bounds = array<i64: 1, 1, 16>}, {transform_indices = @transform_6, window_bounds = array<i64: 1, 16, 32>}, {transform_indices = @transform_7, window_bounds = array<i64: 1, 1, 32>}, {pipeline_mode = #tpu.pipeline_mode<synchronous>, transform_indices = @transform_8, window_bounds = array<i64: 32, 128>}, {pipeline_mode = #tpu.pipeline_mode<synchronous>, transform_indices = @transform_9, window_bounds = array<i64: 1, 128>}, {transform_indices = @transform_10, window_bounds = array<i64: 1, 8, 128>}]} {
    %c0_i32 = arith.constant 0 : i32
    %0 = arith.cmpi eq, %arg1, %c0_i32 : i32
    %1 = arith.extui %0 : i1 to i32
    %c0_i32_0 = arith.constant 0 : i32
    %2 = arith.cmpi ne, %1, %c0_i32_0 : i32
    scf.if %2 {
      %c0_41 = arith.constant 0 : index
      %c0_42 = arith.constant 0 : index
      %c0_43 = arith.constant 0 : index
      %93 = vector.load %arg2[%c0_41, %c0_42, %c0_43] : memref<1x16x16xf32, #tpu.memory_space<vmem>>, vector<1x16x16xf32>
      %94 = vector.shape_cast %93 : vector<1x16x16xf32> to vector<16x16xf32>
      %c0_44 = arith.constant 0 : index
      %c0_45 = arith.constant 0 : index
      %95 = vector.load %arg3[%c0_44, %c0_45] : memref<16x32xf32, #tpu.memory_space<vmem>>, vector<16x32xf32>
      %cst_46 = arith.constant dense<0.000000e+00> : vector<16x32xf32>
      %96 = tpu.matmul %94, %95, %cst_46 {dimension_numbers = #tpu.dot_dimension_numbers<[1], [0], [0], [1], [0, 0, 1, 1], [], []>} : vector<16x16xf32>, vector<16x32xf32>, vector<16x32xf32> -> vector<16x32xf32>
      %c0_47 = arith.constant 0 : index
      %c0_48 = arith.constant 0 : index
      %97 = vector.load %arg4[%c0_47, %c0_48] : memref<1x32xf32, #tpu.memory_space<vmem>>, vector<1x32xf32>
      %98 = vector.broadcast %97 : vector<1x32xf32> to vector<16x32xf32>
      %99 = arith.addf %96, %98 : vector<16x32xf32>
      %cst_49 = arith.constant 0.000000e+00 : f32
      %100 = vector.broadcast %cst_49 : f32 to vector<16x32xf32>
      %101 = arith.maximumf %99, %100 : vector<16x32xf32>
      %c0_50 = arith.constant 0 : index
      %c0_51 = arith.constant 0 : index
      %102 = vector.load %arg13[%c0_50, %c0_51] : memref<16x32xf32, #tpu.memory_space<vmem>>, vector<16x32xf32>
      tpu.vector_store %arg13[%c0_50, %c0_51], %101 {strides = array<i32>} : memref<16x32xf32, #tpu.memory_space<vmem>>, vector<16x32xf32>,
      %cst_52 = arith.constant 0.000000e+00 : f32
      %103 = vector.broadcast %cst_52 : f32 to vector<3x16xf32>
      %c5_53 = arith.constant 5 : index
      %c0_54 = arith.constant 0 : index
      %104 = vector.load %arg14[%c5_53, %c0_54] : memref<25x16xf32, #tpu.memory_space<vmem>>, vector<3x16xf32>
      tpu.vector_store %arg14[%c5_53, %c0_54], %103 {strides = array<i32>} : memref<25x16xf32, #tpu.memory_space<vmem>>, vector<3x16xf32>,
      %cst_55 = arith.constant 0.000000e+00 : f32
      %105 = vector.broadcast %cst_55 : f32 to vector<1x16xf32>
      %c24 = arith.constant 24 : index
      %c0_56 = arith.constant 0 : index
      %106 = vector.load %arg14[%c24, %c0_56] : memref<25x16xf32, #tpu.memory_space<vmem>>, vector<1x16xf32>
      tpu.vector_store %arg14[%c24, %c0_56], %105 {strides = array<i32>} : memref<25x16xf32, #tpu.memory_space<vmem>>, vector<1x16xf32>,
    } else {
    }
    %c0 = arith.constant 0 : index
    %c0_1 = arith.constant 0 : index
    %3 = vector.load %arg13[%c0, %c0_1] : memref<16x32xf32, #tpu.memory_space<vmem>>, vector<16x32xf32>
    %c0_2 = arith.constant 0 : index
    %c0_3 = arith.constant 0 : index
    %c0_4 = arith.constant 0 : index
    %4 = vector.load %arg5[%c0_2, %c0_3, %c0_4] : memref<1x32x16xf32, #tpu.memory_space<vmem>>, vector<1x32x16xf32>
    %5 = vector.shape_cast %4 : vector<1x32x16xf32> to vector<32x16xf32>
    %cst = arith.constant dense<0.000000e+00> : vector<16x16xf32>
    %6 = tpu.matmul %3, %5, %cst {dimension_numbers = #tpu.dot_dimension_numbers<[1], [0], [0], [1], [0, 0, 1, 1], [], []>} : vector<16x32xf32>, vector<32x16xf32>, vector<16x16xf32> -> vector<16x16xf32>
    %c8 = arith.constant 8 : index
    %c0_5 = arith.constant 0 : index
    %7 = vector.load %arg14[%c8, %c0_5] : memref<25x16xf32, #tpu.memory_space<vmem>>, vector<16x16xf32>
    tpu.vector_store %arg14[%c8, %c0_5], %6 {strides = array<i32>} : memref<25x16xf32, #tpu.memory_space<vmem>>, vector<16x16xf32>,
    %8 = tpu.iota {dimensions = array<i32: 0>} : vector<16x1xi32>
    %c8_i32 = arith.constant 8 : i32
    %c0_i32_6 = arith.constant 0 : i32
    %9 = arith.cmpi eq, %c8_i32, %c0_i32_6 : i32
    %c1_i32 = arith.constant 1 : i32
    %10 = arith.select %9, %c1_i32, %c8_i32 : i32
    %11 = vector.broadcast %10 : i32 to vector<16x1xi32>
    %12 = arith.remsi %8, %11 : vector<16x1xi32>
    %c0_i32_7 = arith.constant 0 : i32
    %13 = vector.broadcast %c0_i32_7 : i32 to vector<16x1xi32>
    %14 = arith.cmpi ne, %12, %13 : vector<16x1xi32>
    %c0_i32_8 = arith.constant 0 : i32
    %15 = vector.broadcast %c0_i32_8 : i32 to vector<16x1xi32>
    %16 = arith.cmpi slt, %12, %15 : vector<16x1xi32>
    %c0_i32_9 = arith.constant 0 : i32
    %17 = arith.cmpi slt, %10, %c0_i32_9 : i32
    %18 = vector.broadcast %17 : i1 to vector<16x1xi1>
    %19 = vector.broadcast %18 : vector<16x1xi1> to vector<16x1xi1>
    %20 = arith.xori %16, %19 : vector<16x1xi1>
    %21 = arith.andi %20, %14 : vector<16x1xi1>
    %22 = vector.broadcast %10 : i32 to vector<16x1xi32>
    %23 = arith.addi %12, %22 : vector<16x1xi32>
    %24 = arith.select %21, %23, %12 : vector<16x1xi1>, vector<16x1xi32>
    %c0_10 = arith.constant 0 : index
    %c0_11 = arith.constant 0 : index
    %c0_12 = arith.constant 0 : index
    %25 = vector.load %arg6[%c0_10, %c0_11, %c0_12] : memref<1x4x16xf32, #tpu.memory_space<vmem>>, vector<1x4x16xf32>
    %26 = vector.shape_cast %25 : vector<1x4x16xf32> to vector<4x16xf32>
    %c5 = arith.constant 5 : index
    %c0_13 = arith.constant 0 : index
    %27 = vector.load %arg14[%c5, %c0_13] : memref<25x16xf32, #tpu.memory_space<vmem>>, vector<16x16xf32>
    %c3_i32 = arith.constant 3 : i32
    %28 = vector.broadcast %c3_i32 : i32 to vector<16x1xi32>
    %29 = arith.cmpi sge, %24, %28 : vector<16x1xi32>
    %cst_14 = arith.constant 0.000000e+00 : f32
    %30 = vector.shape_cast %29 : vector<16x1xi1> to vector<16x1xi1>
    %31 = vector.broadcast %30 : vector<16x1xi1> to vector<16x16xi1>
    %32 = vector.broadcast %cst_14 : f32 to vector<16x16xf32>
    %33 = arith.select %31, %27, %32 : vector<16x16xi1>, vector<16x16xf32>
    %34 = vector.extract_strided_slice %26 {offsets = [0, 0], sizes = [1, 16], strides = [1, 1]} : vector<4x16xf32> to vector<1x16xf32>
    %35 = vector.broadcast %34 : vector<1x16xf32> to vector<16x16xf32>
    %36 = arith.mulf %35, %33 : vector<16x16xf32>
    %37 = arith.addf %6, %36 : vector<16x16xf32>
    %c6 = arith.constant 6 : index
    %c0_15 = arith.constant 0 : index
    %38 = vector.load %arg14[%c6, %c0_15] : memref<25x16xf32, #tpu.memory_space<vmem>>, vector<16x16xf32>
    %c2_i32 = arith.constant 2 : i32
    %39 = vector.broadcast %c2_i32 : i32 to vector<16x1xi32>
    %40 = arith.cmpi sge, %24, %39 : vector<16x1xi32>
    %cst_16 = arith.constant 0.000000e+00 : f32
    %41 = vector.shape_cast %40 : vector<16x1xi1> to vector<16x1xi1>
    %42 = vector.broadcast %41 : vector<16x1xi1> to vector<16x16xi1>
    %43 = vector.broadcast %cst_16 : f32 to vector<16x16xf32>
    %44 = arith.select %42, %38, %43 : vector<16x16xi1>, vector<16x16xf32>
    %45 = vector.extract_strided_slice %26 {offsets = [1, 0], sizes = [1, 16], strides = [1, 1]} : vector<4x16xf32> to vector<1x16xf32>
    %46 = vector.broadcast %45 : vector<1x16xf32> to vector<16x16xf32>
    %47 = arith.mulf %46, %44 : vector<16x16xf32>
    %48 = arith.addf %37, %47 : vector<16x16xf32>
    %c7 = arith.constant 7 : index
    %c0_17 = arith.constant 0 : index
    %49 = vector.load %arg14[%c7, %c0_17] : memref<25x16xf32, #tpu.memory_space<vmem>>, vector<16x16xf32>
    %c1_i32_18 = arith.constant 1 : i32
    %50 = vector.broadcast %c1_i32_18 : i32 to vector<16x1xi32>
    %51 = arith.cmpi sge, %24, %50 : vector<16x1xi32>
    %cst_19 = arith.constant 0.000000e+00 : f32
    %52 = vector.shape_cast %51 : vector<16x1xi1> to vector<16x1xi1>
    %53 = vector.broadcast %52 : vector<16x1xi1> to vector<16x16xi1>
    %54 = vector.broadcast %cst_19 : f32 to vector<16x16xf32>
    %55 = arith.select %53, %49, %54 : vector<16x16xi1>, vector<16x16xf32>
    %56 = vector.extract_strided_slice %26 {offsets = [2, 0], sizes = [1, 16], strides = [1, 1]} : vector<4x16xf32> to vector<1x16xf32>
    %57 = vector.broadcast %56 : vector<1x16xf32> to vector<16x16xf32>
    %58 = arith.mulf %57, %55 : vector<16x16xf32>
    %59 = arith.addf %48, %58 : vector<16x16xf32>
    %c8_20 = arith.constant 8 : index
    %c0_21 = arith.constant 0 : index
    %60 = vector.load %arg14[%c8_20, %c0_21] : memref<25x16xf32, #tpu.memory_space<vmem>>, vector<16x16xf32>
    %61 = vector.extract_strided_slice %26 {offsets = [3, 0], sizes = [1, 16], strides = [1, 1]} : vector<4x16xf32> to vector<1x16xf32>
    %62 = vector.broadcast %61 : vector<1x16xf32> to vector<16x16xf32>
    %63 = arith.mulf %62, %60 : vector<16x16xf32>
    %64 = arith.addf %59, %63 : vector<16x16xf32>
    %c0_22 = arith.constant 0 : index
    %c0_23 = arith.constant 0 : index
    %c0_24 = arith.constant 0 : index
    %65 = vector.load %arg7[%c0_22, %c0_23, %c0_24] : memref<1x1x16xf32, #tpu.memory_space<vmem>>, vector<1x1x16xf32>
    %66 = vector.shape_cast %65 : vector<1x1x16xf32> to vector<1x16xf32>
    %c9 = arith.constant 9 : index
    %c0_25 = arith.constant 0 : index
    %67 = vector.load %arg14[%c9, %c0_25] : memref<25x16xf32, #tpu.memory_space<vmem>>, vector<16x16xf32>
    %c7_i32 = arith.constant 7 : i32
    %68 = vector.broadcast %c7_i32 : i32 to vector<16x1xi32>
    %69 = arith.cmpi slt, %24, %68 : vector<16x1xi32>
    %cst_26 = arith.constant 0.000000e+00 : f32
    %70 = vector.shape_cast %69 : vector<16x1xi1> to vector<16x1xi1>
    %71 = vector.broadcast %70 : vector<16x1xi1> to vector<16x16xi1>
    %72 = vector.broadcast %cst_26 : f32 to vector<16x16xf32>
    %73 = arith.select %71, %67, %72 : vector<16x16xi1>, vector<16x16xf32>
    %74 = vector.broadcast %66 : vector<1x16xf32> to vector<16x16xf32>
    %75 = arith.mulf %74, %73 : vector<16x16xf32>
    %76 = arith.addf %64, %75 : vector<16x16xf32>
    %c0_27 = arith.constant 0 : index
    %c0_28 = arith.constant 0 : index
    %c0_29 = arith.constant 0 : index
    %77 = vector.load %arg8[%c0_27, %c0_28, %c0_29] : memref<1x16x32xf32, #tpu.memory_space<vmem>>, vector<1x16x32xf32>
    %78 = vector.shape_cast %77 : vector<1x16x32xf32> to vector<16x32xf32>
    %cst_30 = arith.constant dense<0.000000e+00> : vector<16x32xf32>
    %79 = tpu.matmul %76, %78, %cst_30 {dimension_numbers = #tpu.dot_dimension_numbers<[1], [0], [0], [1], [0, 0, 1, 1], [], []>} : vector<16x16xf32>, vector<16x32xf32>, vector<16x32xf32> -> vector<16x32xf32>
    %c0_31 = arith.constant 0 : index
    %c0_32 = arith.constant 0 : index
    %c0_33 = arith.constant 0 : index
    %80 = vector.load %arg9[%c0_31, %c0_32, %c0_33] : memref<1x1x32xf32, #tpu.memory_space<vmem>>, vector<1x1x32xf32>
    %81 = vector.shape_cast %80 : vector<1x1x32xf32> to vector<1x32xf32>
    %82 = vector.broadcast %81 : vector<1x32xf32> to vector<16x32xf32>
    %83 = arith.addf %79, %82 : vector<16x32xf32>
    %cst_34 = arith.constant 0.000000e+00 : f32
    %84 = vector.broadcast %cst_34 : f32 to vector<16x32xf32>
    %85 = arith.maximumf %83, %84 : vector<16x32xf32>
    %c0_35 = arith.constant 0 : index
    %c0_36 = arith.constant 0 : index
    %86 = vector.load %arg13[%c0_35, %c0_36] : memref<16x32xf32, #tpu.memory_space<vmem>>, vector<16x32xf32>
    tpu.vector_store %arg13[%c0_35, %c0_36], %85 {strides = array<i32>} : memref<16x32xf32, #tpu.memory_space<vmem>>, vector<16x32xf32>,
    %c1_i32_37 = arith.constant 1 : i32
    %87 = arith.cmpi eq, %arg1, %c1_i32_37 : i32
    %88 = arith.extui %87 : i1 to i32
    %c0_i32_38 = arith.constant 0 : i32
    %89 = arith.cmpi ne, %88, %c0_i32_38 : i32
    scf.if %89 {
      %c0_41 = arith.constant 0 : index
      %c0_42 = arith.constant 0 : index
      %93 = vector.load %arg13[%c0_41, %c0_42] : memref<16x32xf32, #tpu.memory_space<vmem>>, vector<8x32xf32>
      %c8_43 = arith.constant 8 : index
      %c0_44 = arith.constant 0 : index
      %94 = vector.load %arg13[%c8_43, %c0_44] : memref<16x32xf32, #tpu.memory_space<vmem>>, vector<8x32xf32>
      %95 = arith.maximumf %93, %94 : vector<8x32xf32>
      %c0_45 = arith.constant 0 : index
      %c0_46 = arith.constant 0 : index
      %96 = vector.load %arg13[%c0_45, %c0_46] : memref<16x32xf32, #tpu.memory_space<vmem>>, vector<8x32xf32>
      tpu.vector_store %arg13[%c0_45, %c0_46], %95 {strides = array<i32>} : memref<16x32xf32, #tpu.memory_space<vmem>>, vector<8x32xf32>,
      %c8_47 = arith.constant 8 : index
      %c0_48 = arith.constant 0 : index
      %97 = vector.load %arg13[%c8_47, %c0_48] : memref<16x32xf32, #tpu.memory_space<vmem>>, vector<8x32xf32>
      tpu.vector_store %arg13[%c8_47, %c0_48], %95 {strides = array<i32>} : memref<16x32xf32, #tpu.memory_space<vmem>>, vector<8x32xf32>,
    } else {
    }
    %c2_i32_39 = arith.constant 2 : i32
    %90 = arith.cmpi eq, %arg1, %c2_i32_39 : i32
    %91 = arith.extui %90 : i1 to i32
    %c0_i32_40 = arith.constant 0 : i32
    %92 = arith.cmpi ne, %91, %c0_i32_40 : i32
    scf.if %92 {
      %c0_41 = arith.constant 0 : index
      %c0_42 = arith.constant 0 : index
      %93 = vector.load %arg13[%c0_41, %c0_42] : memref<16x32xf32, #tpu.memory_space<vmem>>, vector<8x32xf32>
      %c0_43 = arith.constant 0 : index
      %c0_44 = arith.constant 0 : index
      %94 = vector.load %arg10[%c0_43, %c0_44] : memref<32x128xf32, #tpu.memory_space<vmem>>, vector<32x128xf32>
      %cst_45 = arith.constant dense<0.000000e+00> : vector<8x128xf32>
      %95 = tpu.matmul %93, %94, %cst_45 {dimension_numbers = #tpu.dot_dimension_numbers<[1], [0], [0], [1], [0, 0, 1, 1], [], []>} : vector<8x32xf32>, vector<32x128xf32>, vector<8x128xf32> -> vector<8x128xf32>
      %c0_46 = arith.constant 0 : index
      %c0_47 = arith.constant 0 : index
      %96 = vector.load %arg11[%c0_46, %c0_47] : memref<1x128xf32, #tpu.memory_space<vmem>>, vector<1x128xf32>
      %97 = vector.broadcast %96 : vector<1x128xf32> to vector<8x128xf32>
      %98 = arith.addf %95, %97 : vector<8x128xf32>
      %c0_48 = arith.constant 0 : index
      %c0_49 = arith.constant 0 : index
      %c0_50 = arith.constant 0 : index
      %99 = vector.load %arg12[%c0_48, %c0_49, %c0_50] : memref<1x8x128xf32, #tpu.memory_space<vmem>>, vector<1x8x128xf32>
      %100 = vector.shape_cast %99 : vector<1x8x128xf32> to vector<8x128xf32>
      %101 = vector.shape_cast %98 : vector<8x128xf32> to vector<1x8x128xf32>
      tpu.vector_store %arg12[%c0_48, %c0_49, %c0_50], %101 {strides = array<i32>} : memref<1x8x128xf32, #tpu.memory_space<vmem>>, vector<1x8x128xf32>,
    } else {
    }
    return
  }
  func.func @transform_0(%arg0: i32, %arg1: i32) -> (i32, i32, i32) {
    %c0_i32 = arith.constant 0 : i32
    %c0_i32_0 = arith.constant 0 : i32
    %c0_i32_1 = arith.constant 0 : i32
    return %arg0, %c0_i32, %c0_i32_0 : i32, i32, i32
  }
  func.func @transform_1(%arg0: i32, %arg1: i32) -> (i32, i32) {
    %c0_i32 = arith.constant 0 : i32
    %c0_i32_0 = arith.constant 0 : i32
    %c0_i32_1 = arith.constant 0 : i32
    return %c0_i32, %c0_i32_0 : i32, i32
  }
  func.func @transform_2(%arg0: i32, %arg1: i32) -> (i32, i32) {
    %c0_i32 = arith.constant 0 : i32
    %c0_i32_0 = arith.constant 0 : i32
    %c0_i32_1 = arith.constant 0 : i32
    return %c0_i32, %c0_i32_0 : i32, i32
  }
  func.func @transform_3(%arg0: i32, %arg1: i32) -> (i32, i32, i32) {
    %c0_i32 = arith.constant 0 : i32
    %c0_i32_0 = arith.constant 0 : i32
    %c0_i32_1 = arith.constant 0 : i32
    return %arg1, %c0_i32, %c0_i32_0 : i32, i32, i32
  }
  func.func @transform_4(%arg0: i32, %arg1: i32) -> (i32, i32, i32) {
    %c0_i32 = arith.constant 0 : i32
    %c0_i32_0 = arith.constant 0 : i32
    %c0_i32_1 = arith.constant 0 : i32
    return %arg1, %c0_i32, %c0_i32_0 : i32, i32, i32
  }
  func.func @transform_5(%arg0: i32, %arg1: i32) -> (i32, i32, i32) {
    %c0_i32 = arith.constant 0 : i32
    %c0_i32_0 = arith.constant 0 : i32
    %c0_i32_1 = arith.constant 0 : i32
    return %arg1, %c0_i32, %c0_i32_0 : i32, i32, i32
  }
  func.func @transform_6(%arg0: i32, %arg1: i32) -> (i32, i32, i32) {
    %c0_i32 = arith.constant 0 : i32
    %c0_i32_0 = arith.constant 0 : i32
    %c0_i32_1 = arith.constant 0 : i32
    return %arg1, %c0_i32, %c0_i32_0 : i32, i32, i32
  }
  func.func @transform_7(%arg0: i32, %arg1: i32) -> (i32, i32, i32) {
    %c0_i32 = arith.constant 0 : i32
    %c0_i32_0 = arith.constant 0 : i32
    %c0_i32_1 = arith.constant 0 : i32
    return %arg1, %c0_i32, %c0_i32_0 : i32, i32, i32
  }
  func.func @transform_8(%arg0: i32, %arg1: i32) -> (i32, i32) {
    %c0_i32 = arith.constant 0 : i32
    %c0_i32_0 = arith.constant 0 : i32
    %c0_i32_1 = arith.constant 0 : i32
    return %c0_i32, %c0_i32_0 : i32, i32
  }
  func.func @transform_9(%arg0: i32, %arg1: i32) -> (i32, i32) {
    %c0_i32 = arith.constant 0 : i32
    %c0_i32_0 = arith.constant 0 : i32
    %c0_i32_1 = arith.constant 0 : i32
    return %c0_i32, %c0_i32_0 : i32, i32
  }
  func.func @transform_10(%arg0: i32, %arg1: i32) -> (i32, i32, i32) {
    %c0_i32 = arith.constant 0 : i32
    %c0_i32_0 = arith.constant 0 : i32
    %c0_i32_1 = arith.constant 0 : i32
    return %arg0, %c0_i32, %c0_i32_0 : i32, i32, i32
  }
}

</mosaic_0001>

<bundles_post_ra>
// kernel: fsmn_sele_net_v2.1
= control target key start
LH: loop header
LB: loop body
LE: loop exit
PB: predicated region body
PF: predicated region fallthrough
CT: control target
= control target key end

     0   :  { %s1328_s13 = smov 0   ;;  %s1330_s14 = smov 0   ;;  %s1470_s0 = inlined_call_operand.vmem [shape: f32[2,16,16], index: 0, kind: input, shape index: {}]   ;;  %s1471_s1 = inlined_call_operand.vmem [shape: f32[16,32], index: 1, kind: input, shape index: {}]   ;;  %s1472_s2 = inlined_call_operand.vmem [shape: f32[1,32], index: 2, kind: input, shape index: {}]   ;;  %s1473_s3 = inlined_call_operand.vmem [shape: f32[3,32,16], index: 3, kind: input, shape index: {}]   ;;  %s1474_s4 = inlined_call_operand.vmem [shape: f32[3,4,16], index: 4, kind: input, shape index: {}]   ;;  %s1475_s5 = inlined_call_operand.vmem [shape: f32[3,1,16], index: 5, kind: input, shape index: {}]   ;;  %s1476_s6 = inlined_call_operand.vmem [shape: f32[3,16,32], index: 6, kind: input, shape index: {}]   ;;  %s1477_s7 = inlined_call_operand.vmem [shape: f32[3,1,32], index: 7, kind: input, shape index: {}]   ;;  %s1478_s8 = inlined_call_operand.vmem [shape: f32[32,128], index: 8, kind: input, shape index: {}]   ;;  %s1479_s9 = inlined_call_operand.vmem [shape: f32[1,128], index: 9, kind: input, shape index: {}]   ;;  %s1480_s10 = inlined_call_operand.vmem [shape: f32[2,8,128], index: 10, kind: output, shape index: {}]  }
   0x1   :  { %1484 = sst [smem:[#allocation9_spill]] %s1470_s0  ;;  %s1332_s15 = smov 0  }
   0x2   :  { %s1334_s16 = smov 0   ;;  %s1336_s17 = smov 0  }
   0x3 LB: > { %1485 = sst [smem:[#allocation4_spill]] %s1259_s15  ;;  %s29_s18 = sadd.s32 1, %s1259_s15  ;;  %s1267_s17 = sphi %s1336_s17, %s20_s17   ;;  %s1263_s16 = sphi %s1334_s16, %s1495_s16   ;;  %s1259_s15 = sphi %s1332_s15, %s1494_s15   ;;  %s1255_s14 = sphi %s1330_s14, %s1493_s14   ;;  %s1251_s13 = sphi %s1328_s13, %s1492_s13  }
   0x4   : > { %1486 = sst [smem:[#allocation5_spill]] %s1263_s16  ;;  %s32_s19 = sadd.s32 1, %s1263_s16 }
   0x5   : > { %1487 = sst [smem:[#allocation6_spill]] %s1267_s17  ;;  %p30_p0 = scmp.ge.s32.totalorder %s29_s18, 3 }
   0x6   : > { %p1080_p1 = scmp.ge.s32.totalorder %s1267_s17, 1  ;;  %p369_p2 = scmp.lt.s32.totalorder %s1267_s17, 7 }
   0x7   : > { %s1497_s18 = smov (%p30_p0, %s29_s18), 0  ;;  %s1499_s19 = smov (!%p30_p0, %s32_s19), %s1263_s16 }
   0x8   : > { %1488 = sst [smem:[#allocation7_spill]] %s1497_s18  ;;  %p370_p3 = pnand %p1080_p1, %p369_p2 }
   0x9   : > { %p34_p4 = scmp.ge.s32.totalorder %s1499_s19, 2  ;;  %p426_p5 = scmp.lt.s32.totalorder (!%p370_p3), %s1255_s14, 1 }
   0xa   : > { %373 = sbr.rel (%p370_p3) target bundleno = 943 (0x3af), region = 60  ;;  %p431_p6 = scmp.lt.s32.totalorder (!%p370_p3), %s1251_s13, 2 }
   0xb   : > { %s1501_s19 = smov (%p34_p4, %s1499_s19), 0  ;;  %s1490_s0 = sld [smem:[#allocation9_spill]] (!%p370_p3) }
   0xc   : > { %1489 = sst [smem:[#allocation8_spill]] %s1501_s19  ;;  %p1089_p7 = scmp.ne.s32.totalorder (!%p370_p3), %s1251_s13, 0 }
  0x11   : > { %s1503_s14 = smov (!%p426_p5, %s1255_s14), 1  ;;  %v461_v0 = vld [vmem:[%s1471_s1] sm:$0xff] (!%p1089_p7)  ;;  %v462_v1 = vld [vmem:[%s1471_s1 + $0x8] sm:$0xff] (!%p1089_p7)  ;;  %vm470_vm0 = vcmask (!%p1089_p7), 130048   ;;  %vm557_vm1 = vcmask (!%p1089_p7), 124928   ;;  %vm559_vm2 = vcmask (!%p1089_p7), 122880  }
  0x12   : > { %s1362_s20 = scalar_select %p431_p6, %s1251_s13, 2 }
  0x13   : > { %s1105_s21 = sshll.u32 %s1503_s14, 4  ;;  %s1088_s22 = sshll.u32 %s1503_s14, 3  ;;  %v1163_v3 = vpack.c.bf16 (!%p1089_p7), %v462_v1, %v461_v0  ;;  %v1269_v5 = vmov (!%p1089_p7), 0.0   ;;  %v1090_v6 = vld [vmem:[%s1472_s2] ss:$0 sm:$0xff] (!%p1089_p7)  ;;  %vm554_vm3 = vcmask (!%p1089_p7), 261120  }
  0x14   : > { %s430_s25 = scalar_lea.vmem %s1490_s0, %s1105_s21  ;;  %s1106_s26 = sshll.u32 %s1362_s20, 5  ;;  %558 = vst.msk [vmem:[#allocation3 + $0x5] sm:$0x7] (!%p1089_p7), %vm557_vm1, %v1269_v5 }
  0x15   : > { %s1371_s29 = scalar_lea.vmem %s1473_s3, %s1106_s26  ;;  %s1085_s30 = sshll.u32 %s1362_s20, 2  ;;  %v459_v2 = vld [vmem:[%s430_s25] sm:$0xff] (!%p1089_p7)  ;;  %1164 = vmatprep.subr.bf16.mxu0 (!%p1089_p7), %v1163_v3  ;;  %v460_v4 = vld [vmem:[%s430_s25 + $0x8] sm:$0xff] (!%p1089_p7)  ;;  %560 = vst.msk [vmem:[#allocation3 + $0x18] sm:$0x1] (!%p1089_p7), %vm559_vm2, %v1269_v5 }
  0x16   : > { %s1377_s19 = scalar_lea.vmem %s1474_s4, %s1085_s30  ;;  %s442_s14 = scalar_lea.vmem %s1475_s5, %s1362_s20  ;;  %1131 = vmatprep.mubr.msk.f32.mxu0 (!%p1089_p7), %vm470_vm0, %v459_v2  ;;  %1166 = vmatpush3.bf16.msra.mxu0 (!%p1089_p7), %v1163_v3 }
  0x17   : > { %s1107_s15 = sshll.u32 %s1362_s20, 4  ;;  %s450_s21 = scalar_lea.vmem %s1477_s7, %s1362_s20 }
  0x18   : > { %s1391_s26 = scalar_lea.vmem %s1476_s6, %s1107_s15  ;;  %s1396_s11 = scalar_lea.vmem %s1480_s10, %s1088_s22 }
  0x19   : > { %458 = sbr.rel (%p1089_p7) target bundleno = 243 (0xf3), region = 64  ;;  %1132 = vmatmul.mubr.msk.f32.vlgmr.msra.gmra.mrb[0].mxu0 (!%p1089_p7), %vm470_vm0, %v460_v4 }
  0xec   : > { %v1133_v7 = vpop.f32.mrb[0].mxu0 }
  0xed   : > { %v549_v8 = vadd.f32 %v1133_v7, %v1090_v6  ;;  %v543_v9 = vpop.f32.mrb[1].mxu0 }
  0xee   : > { %v544_v10 = vadd.f32 %v1090_v6, %v543_v9 }
  0xef   : > { %v553_v11 = vmax.f32 %v549_v8, 0.0 }
  0xf0   : > { %v552_v12 = vmax.f32 %v544_v10, 0.0 }
  0xf1   : > { %556 = vst.msk [vmem:[#allocation2 + $0x8] sm:$0xff] %vm554_vm3, %v553_v11 }
  0xf2   : > { %555 = vst.msk [vmem:[#allocation2] sm:$0xff] %vm554_vm3, %v552_v12 }
  0xf3 PF: > { %v563_v13 = vld [vmem:[%s1371_s29] sm:$0xff]  ;;  %v564_v14 = vld [vmem:[%s1371_s29 + $0x8] sm:$0xff]  ;;  %v565_v15 = vld [vmem:[%s1371_s29 + $0x10] sm:$0xff]  ;;  %vm567_vm4 = vcmask 261120   ;;  %v652_v24 = vlaneseq  ;;  %vm649_vm5 = vcmask 130048   ;;  %p1099_p8 = scmp.ne.s32.totalorder %s1251_s13, 1 }
  0xf4   : > { %v1167_v16 = vpack.c.bf16 %v564_v14, %v563_v13  ;;  %v566_v17 = vld [vmem:[%s1371_s29 + $0x18] sm:$0xff]  ;;  %v765_v21 = vld [vmem:[%s1391_s26] sm:$0xff]  ;;  %v766_v22 = vld [vmem:[%s1391_s26 + $0x8] sm:$0xff] }
  0xf5   : > { %v1171_v19 = vpack.c.bf16 %v566_v17, %v565_v15  ;;  %v1175_v23 = vpack.c.bf16 %v766_v22, %v765_v21  ;;  %v653_v25 = vshrl.u32 %v652_v24, 7  ;;  %v679_v33 = vld [vmem:[%s1377_s19] sm:$0xf] }
  0xf6   : > { %1168 = vmatprep.subr.bf16.mxu0 %v1167_v16  ;;  %v1095_v2 = vld [vmem:[%s442_s14] ss:$0 sm:$0xff] }
  0xf7   : > { %1170 = vmatpush3.bf16.msra.mxu0 %v1167_v16  ;;  %1176 = vmatprep.subr.bf16.mxu1 %v1175_v23  ;;  %v654_v26 = vadd.s32 8, %v653_v25  ;;  %v659_v29 = vand.u32 7, %v653_v25  ;;  %v692_v31 = vsub.s32 0, %v653_v25  ;;  %v710_v32 = vsub.s32 1, %v653_v25  ;;  %v1096_v15 = vld [vmem:[%s450_s21] ss:$0 sm:$0xff] }
  0xf8   : > { %1172 = vmatprep.subr.bf16.mxu0 %v1171_v19  ;;  %v562_v20 = vld [vmem:[#allocation2 + $0x8] sm:$0xff]  ;;  %1178 = vmatpush3.bf16.msra.mxu1 %v1175_v23  ;;  %v728_v34 = vsub.s32 2, %v653_v25  ;;  %v738_v35 = vsub.s32 3, %v653_v25 }
  0xf9   : > { %v561_v18 = vld [vmem:[#allocation2] sm:$0xff]  ;;  %v666_v30 = vand.u32 7, %v654_v26  ;;  %vm682_vm6 = vcmp.ge.s32.totalorder %v659_v29, 3  ;;  %v693_v36 = vrot.slane %v679_v33, %v692_v31  ;;  %vm700_vm8 = vcmp.ge.s32.totalorder %v659_v29, 2 }
  0xfa   : > { %1142 = vmatprep.mubr.msk.f32.mxu0 %vm567_vm4, %v561_v18  ;;  %v711_v40 = vrot.slane %v679_v33, %v710_v32  ;;  %vm718_vm10 = vcmp.ge.s32.totalorder %v659_v29, 1  ;;  %v729_v47 = vrot.slane %v679_v33, %v728_v34  ;;  %v739_v51 = vrot.slane %v679_v33, %v738_v35 }
  0xfb   : > { %1174 = vmatpush3.bf16.msra.mxu0 %v1171_v19  ;;  %vm683_vm7 = vcmp.ge.s32.totalorder %v666_v30, 3  ;;  %vm701_vm9 = vcmp.ge.s32.totalorder %v666_v30, 2  ;;  %vm719_vm11 = vcmp.ge.s32.totalorder %v666_v30, 1  ;;  %vm747_vm12 = vcmp.lt.s32.totalorder %v659_v29, 7 }
  0xfc   : > { %vm748_vm13 = vcmp.lt.s32.totalorder %v666_v30, 7 }
  0xfe   : > { %1143 = vmatmul.mubr.msk.f32.vlgmr.msra.gmra.mrb[0].mxu0 %vm567_vm4, %v562_v20 }
 0x1d1   : > { %v1144_v27 = vpop.f32.mrb[0].mxu0 }
 0x1d2   : > { %651 = vst.msk [vmem:[#allocation3 + $0x10] sm:$0xff] %vm649_vm5, %v1144_v27  ;;  %v640_v28 = vpop.f32.mrb[1].mxu0 }
 0x1d3   : > { %650 = vst.msk [vmem:[#allocation3 + $0x8] sm:$0xff] %vm649_vm5, %v640_v28 }
 0x1d9   : > { %v746_v59 = vld [vmem:[#allocation3 + $0x11] sm:$0xff] }
 0x1da   : > { %v680_v37 = vld [vmem:[#allocation3 + $0x5] sm:$0xff]  ;;  %v681_v38 = vld [vmem:[#allocation3 + $0xd] sm:$0xff]  ;;  %v754_v4 = vsel %vm748_vm13, %v746_v59, 0.0 }
 0x1db   : > { %v698_v39 = vld [vmem:[#allocation3 + $0x6] sm:$0xff]  ;;  %v688_v41 = vsel %vm682_vm6, %v680_v37, 0.0  ;;  %v689_v42 = vsel %vm683_vm7, %v681_v38, 0.0  ;;  %v699_v43 = vld [vmem:[#allocation3 + $0xe] sm:$0xff]  ;;  %v762_v11 = vmul.f32 %v1095_v2, %v754_v4 }
 0x1dc   : > { %v706_v44 = vsel %vm700_vm8, %v698_v39, 0.0  ;;  %v716_v45 = vld [vmem:[#allocation3 + $0x7] sm:$0xff]  ;;  %v717_v46 = vld [vmem:[#allocation3 + $0xf] sm:$0xff]  ;;  %v694_v48 = vmul.f32 %v693_v36, %v688_v41  ;;  %v695_v49 = vmul.f32 %v693_v36, %v689_v42  ;;  %v707_v50 = vsel %vm701_vm9, %v699_v43, 0.0 }
 0x1dd   : > { %v724_v52 = vsel %vm718_vm10, %v716_v45, 0.0  ;;  %v725_v53 = vsel %vm719_vm11, %v717_v46, 0.0  ;;  %v712_v56 = vmul.f32 %v711_v40, %v706_v44  ;;  %v713_v57 = vmul.f32 %v711_v40, %v707_v50  ;;  %v745_v58 = vld [vmem:[#allocation3 + $0x9] sm:$0xff] }
 0x1de   : > { %v696_v54 = vadd.f32 %v694_v48, %v640_v28  ;;  %v697_v55 = vadd.f32 %v1144_v27, %v695_v49  ;;  %v734_v60 = vld [vmem:[#allocation3 + $0x8] sm:$0xff]  ;;  %v735_v61 = vld [vmem:[#allocation3 + $0x10] sm:$0xff]  ;;  %v730_v0 = vmul.f32 %v729_v47, %v724_v52  ;;  %v731_v1 = vmul.f32 %v729_v47, %v725_v53 }
 0x1df   : > { %v753_v3 = vsel %vm747_vm12, %v745_v58, 0.0  ;;  %v740_v6 = vmul.f32 %v739_v51, %v734_v60  ;;  %v741_v7 = vmul.f32 %v739_v51, %v735_v61 }
 0x1e0   : > { %v714_v62 = vadd.f32 %v712_v56, %v696_v54  ;;  %v715_v63 = vadd.f32 %v713_v57, %v697_v55  ;;  %v761_v10 = vmul.f32 %v1095_v2, %v753_v3 }
 0x1e2   : > { %v732_v5 = vadd.f32 %v730_v0, %v714_v62  ;;  %v733_v8 = vadd.f32 %v731_v1, %v715_v63 }
 0x1e4   : > { %v742_v9 = vadd.f32 %v740_v6, %v732_v5  ;;  %v743_v12 = vadd.f32 %v741_v7, %v733_v8 }
 0x1e6   : > { %v763_v13 = vadd.f32 %v761_v10, %v742_v9  ;;  %v764_v14 = vadd.f32 %v762_v11, %v743_v12 }
 0x1e8   : > { %1149 = vmatprep.mubr.msk.f32.mxu1 %vm649_vm5, %v763_v13 }
 0x1e9   : > { %1150 = vmatmul.mubr.msk.f32.vlgmr.msra.gmra.mrb[0].mxu1 %vm649_vm5, %v764_v14 }
 0x2bc   : > { %v1151_v16 = vpop.f32.mrb[0].mxu1  ;;  %862 = sbr.rel (%p1099_p8) target bundleno = 717 (0x2cd), region = 68 }
 0x2bd   : > { %v852_v17 = vadd.f32 %v1151_v16, %v1096_v15  ;;  %v846_v18 = vpop.f32.mrb[1].mxu1 }
 0x2be   : > { %v847_v19 = vadd.f32 %v1096_v15, %v846_v18 }
 0x2bf   : > { %v856_v20 = vmax.f32 %v852_v17, 0.0 }
 0x2c0   : > { %v855_v21 = vmax.f32 %v847_v19, 0.0 }
 0x2c1   : > { %858 = vst.msk [vmem:[#allocation2 + $0x8] sm:$0xff] %vm567_vm4, %v856_v20 }
 0x2c2   : > { %857 = vst.msk [vmem:[#allocation2] sm:$0xff] %vm567_vm4, %v855_v21 }
 0x2c8   : > { %v864_v23 = vld [vmem:[#allocation2 + $0x8] sm:$0xff] }
 0x2c9   : > { %v863_v22 = vld [vmem:[#allocation2] sm:$0xff] }
 0x2ca   : > { %v865_v24 = vmax.f32 %v863_v22, %v864_v23 }
 0x2cc   : > { %866 = vst.msk [vmem:[#allocation2] sm:$0xff] %vm567_vm4, %v865_v24  ;;  %867 = vst.msk [vmem:[#allocation2 + $0x8] sm:$0xff] %vm567_vm4, %v865_v24 }
 0x2cd PF: > { %p1100_p9 = scmp.ne.s32.totalorder %s1251_s13, 2 }
 0x2ce   : > { %v873_v25 = vld [vmem:[%s1478_s8] sm:$0xff] (!%p1100_p9)  ;;  %v874_v26 = vld [vmem:[%s1478_s8 + $0x8] sm:$0xff] (!%p1100_p9)  ;;  %v875_v27 = vld [vmem:[%s1478_s8 + $0x10] sm:$0xff] (!%p1100_p9)  ;;  %v1270_v28 = vmov (!%p1100_p9), 0.0|0.0   ;;  %vm1271_vm14 = vmmov (!%p1100_p9), 0   ;;  %v1272_v31 = vmov (!%p1100_p9), 0.0  }
 0x2cf   : > { %871 = sbr.rel (%p1100_p9) target bundleno = 943 (0x3af), region = 72  ;;  %1179 = vmatprep.subr.bf16.mxu0 (!%p1100_p9), %v1270_v28  ;;  %v1180_v29 = vpack.c.bf16 (!%p1100_p9), %v874_v26, %v873_v25  ;;  %v876_v30 = vld [vmem:[%s1478_s8 + $0x18] sm:$0xff] (!%p1100_p9)  ;;  %1160 = vmatprep.mubr.msk.f32.mxu0 (!%p1100_p9), %vm1271_vm14, %v1272_v31  ;;  %v1101_v34 = vld [vmem:[%s1479_s9] ss:$0 sm:$0xff] (!%p1100_p9) }
 0x2d0   : > { %v1183_v32 = vpack.c.bf16 (!%p1100_p9), %v876_v30, %v875_v27 }
 0x2d1   : > { %1181 = vmatpush3.bf16.msra.mxu0 (!%p1100_p9), %v1180_v29 }
 0x2d2   : > { %1182 = vmatprep.subr.bf16.mxu0 (!%p1100_p9), %v1270_v28 }
 0x2d3   : > { %v872_v33 = vld [vmem:[#allocation2] sm:$0xff] (!%p1100_p9) }
 0x2d5   : > { %1184 = vmatpush3.bf16.msra.mxu0 (!%p1100_p9), %v1183_v32 }
 0x2d8   : > { %1161 = vmatmul.mubr.msk.f32.vlgmr.msra.gmra.mrb[0].mxu0 %vm567_vm4, %v872_v33 }
 0x3ab   : > { %v953_v35 = vpop.f32.mrb[0].mxu0 }
 0x3ac   : > { %v954_v36 = vadd.f32 %v1101_v34, %v953_v35  ;;  %v1162_v37 = vpop.f32.mrb[1].mxu0 }
 0x3ae   : > { %957 = vst [vmem:[%s1396_s11] sm:$0xff] %v954_v36 }
 0x3af PF: > { %s1491_s16 = sld [smem:[#allocation6_spill]]  ;;  %s1492_s13 = sld [smem:[#allocation4_spill]] }
 0x3b0   : > { %s1493_s14 = sld [smem:[#allocation5_spill]]  ;;  %s1494_s15 = sld [smem:[#allocation7_spill]] }
 0x3b5   : > { %s20_s17 = sadd.s32 1, %s1491_s16   ;;  %s1495_s16 = sld [smem:[#allocation8_spill]] }
 0x3b6   : > { %p17_p10 = scmp.ge.s32.totalorder %s20_s17, 8  }
 0x3b8   :  { %19 = sbr.rel (!%p17_p10) target bundleno = 3 (0x3), region = 117 }

</bundles_post_ra>
